<compile_context>
chip_gen: v7x
topology: tpu7x:2x2x1
jax: 0.10.0
libtpu: 0.0.40
codegen_flags: <defaults>
</compile_context>

<pallas_src>
import functools

import jax
import jax.numpy as jnp
from jax.experimental import pallas as pl
from jax.experimental.pallas import tpu as pltpu


_LANE = 128
# Budget for ALL double-buffered streamed blocks (logits x2 + labels x2 +
# pred x2), counted with lane padding.  Fits v7x's 64 MiB physical VMEM with
# plenty of headroom once vmem_limit_bytes is raised accordingly.
_VMEM_TILE_BUDGET = 24 << 20


def _round_up(n, m):
    return -(-n // m) * m


def _tile_vmem_bytes(tile_b, num_classes, itemsize):
    """Lane-PADDED VMEM bytes of ONE buffer of each streamed block."""
    logits = tile_b * _round_up(num_classes, _LANE) * itemsize
    labels = tile_b * _LANE * 4          # (tile_b, 1) int32 -> lanes pad to 128
    pred = tile_b * _LANE * 4            # (tile_b, 1) int32 output column
    return logits + labels + pred


def _pick_tile_b(batch, num_classes, itemsize):
    """Largest batch tile whose double-buffered, lane-padded footprint fits."""
    sublane = max(8, 32 // max(1, itemsize))          # 8 f32, 16 bf16, 32 int8
    per_row = 2 * (_round_up(num_classes, _LANE) * itemsize + 2 * _LANE * 4)
    rows = _VMEM_TILE_BUDGET // per_row
    rows = max(sublane, (rows // sublane) * sublane)  # sublane-aligned, no cap
    b_pad = _round_up(batch, sublane)
    return int(min(rows, b_pad))


# ----------------------------------------------------------------------------
# Fused kernel: cross-entropy partial sums + argmax (predict) + correct count
# ----------------------------------------------------------------------------
def _fused_predictor_kernel(logits_ref, labels_ref,
                            pred_ref, loss_part_ref, acc_part_ref,
                            *, batch, tile_b):
    i = pl.program_id(0)

    logits = logits_ref[...].astype(jnp.float32)      # (tile_b, C), f32 math
    labels = labels_ref[...]                          # (tile_b, 1) int32

    # Mask rows of the (possibly partial) last tile that lie beyond the batch.
    row = i * tile_b + jax.lax.broadcasted_iota(jnp.int32, (tile_b, 1), 0)
    valid = row < batch                               # (tile_b, 1) bool

    # Numerically-stable logsumexp along the class (lane) axis.
    m = jnp.max(logits, axis=-1, keepdims=True)                       # (tile_b, 1)
    lse = m + jnp.log(jnp.sum(jnp.exp(logits - m), axis=-1, keepdims=True))

    # True-class logit via a lane-iota one-hot mask (no gather needed).
    col = jax.lax.broadcasted_iota(jnp.int32, logits.shape, 1)        # (tile_b, C)
    onehot = col == labels
    true_logit = jnp.sum(jnp.where(onehot, logits, 0.0), axis=-1, keepdims=True)
    nll = lse - true_logit                                            # (tile_b, 1)

    # argmax: reuse the row max from logsumexp; first index where logits == max
    # (same tie-break as torch.argmax / jnp.argmax).
    num_classes = logits.shape[-1]
    idx = jnp.min(jnp.where(logits == m, col, jnp.int32(num_classes)),
                  axis=-1, keepdims=True)                             # (tile_b, 1)
    pred_ref[...] = idx

    correct = (idx == labels).astype(jnp.float32)                     # (tile_b, 1)

    # Per-tile masked partial sums written to this tile's own (1,1,1) block:
    # no carried state across grid steps, so the batch axis can be "parallel"
    # (megacore sharding on v7x).  Final sum + divide happens in the wrapper.
    loss_part = jnp.sum(jnp.where(valid, nll, 0.0), axis=0, keepdims=True)      # (1,1)
    acc_part = jnp.sum(jnp.where(valid, correct, 0.0), axis=0, keepdims=True)   # (1,1)
    loss_part_ref[0] = loss_part
    acc_part_ref[0] = acc_part


def predictor_metrics(prediction, truth, *, tile_b=None, logits_buffers=None):
    """Fused CE-loss + argmax + accuracy in one pass over the logits.

    prediction: [B, C] logits (any float dtype; read natively, upcast in-kernel)
    truth:      [B] or [B, 1] integer class labels
    Returns: (loss f32 scalar, pred int32 [B], accuracy f32 scalar)
    """
    if prediction.ndim == 1:                 # mirrors `prediction.unsqueeze(0)`
        prediction = prediction[None, :]
    batch, num_classes = prediction.shape
    labels = jnp.reshape(truth, (-1, 1)).astype(jnp.int32)   # squeeze(-1) + 2D

    itemsize = prediction.dtype.itemsize
    if tile_b is None:
        tile_b = _pick_tile_b(batch, num_classes, itemsize)
    num_tiles = int(pl.cdiv(batch, tile_b))

    # Explicit scoped-VMEM limit from the lane-padded footprint (+25% + 1 MiB),
    # floored at 4 MiB and capped below v7x's 64 MiB physical VMEM.
    needed = 2 * _tile_vmem_bytes(tile_b, num_classes, itemsize) + (1 << 16)
    vmem_limit = int(min(max(needed * 5 // 4 + (1 << 20), 4 << 20), 60 << 20))

    kernel = functools.partial(_fused_predictor_kernel,
                               batch=batch, tile_b=tile_b)

    if logits_buffers is None:
        logits_spec = pl.BlockSpec((tile_b, num_classes), lambda i: (i, 0))
    else:  # optional deeper pipelining of the logits stream (v5e/v6e tuning)
        logits_spec = pl.BlockSpec((tile_b, num_classes), lambda i: (i, 0),
                                   pipeline_mode=pl.Buffered(int(logits_buffers)))

    pred, loss_parts, acc_parts = pl.pallas_call(
        kernel,
        out_shape=(
            jax.ShapeDtypeStruct((batch, 1), jnp.int32),          # argmax per row
            jax.ShapeDtypeStruct((num_tiles, 1, 1), jnp.float32),  # CE partial sums
            jax.ShapeDtypeStruct((num_tiles, 1, 1), jnp.float32),  # correct counts
        ),
        grid_spec=pltpu.PrefetchScalarGridSpec(
            num_scalar_prefetch=0,
            grid=(num_tiles,),
            in_specs=[
                logits_spec,
                pl.BlockSpec((tile_b, 1), lambda i: (i, 0)),
            ],
            out_specs=(
                pl.BlockSpec((tile_b, 1), lambda i: (i, 0)),
                pl.BlockSpec((1, 1, 1), lambda i: (i, 0, 0)),
                pl.BlockSpec((1, 1, 1), lambda i: (i, 0, 0)),
            ),
        ),
        compiler_params=pltpu.CompilerParams(
            dimension_semantics=("parallel",),   # no carried state -> megacore OK
            vmem_limit_bytes=vmem_limit,
        ),
    )(prediction, labels)

    inv_b = jnp.float32(1.0 / batch)
    loss = jnp.sum(loss_parts) * inv_b
    acc = jnp.sum(acc_parts) * inv_b
    return loss, pred[:, 0], acc


# ----------------------------------------------------------------------------
# Thin JAX-side analogue of BasePredictor (construct/forward are abstract)
# ----------------------------------------------------------------------------
class BasePredictorPallas:
    def __init__(self, N_word, hidden_dim, num_layers, gpu=False, use_hs=True):
        self.N_word = N_word
        self.hidden_dim = hidden_dim
        self.num_layers = num_layers
        self.gpu = gpu
        self.use_hs = use_hs
        # construct() is `pass` in the reference module -> no parameters.

    def evaluate(self, prediction, truth, *, tile_b=None, logits_buffers=None):
        """Single fused kernel launch -> (loss, pred, accuracy)."""
        return predictor_metrics(prediction, truth, tile_b=tile_b,
                                 logits_buffers=logits_buffers)

    def loss(self, prediction, truth):
        loss, _, _ = predictor_metrics(prediction, truth)
        return loss

    def accuracy(self, prediction, truth):
        _, _, acc = predictor_metrics(prediction, truth)
        return acc

    def predict(self, prediction, truth=None):
        if truth is None:
            truth = jnp.zeros((prediction.shape[0],), jnp.int32)
        _, pred, _ = predictor_metrics(prediction, truth)
        return pred


if __name__ == "__main__":
    key = jax.random.PRNGKey(0)
    k1, k2 = jax.random.split(key)

    # batch deliberately NOT a multiple of the tile -> exercises the masked
    # partial-tile path and multi-tile per-tile partial-sum accumulation.
    B, C = 20, 32
    logits = jax.random.normal(k1, (B, C), dtype=jnp.float32)
    truth = jax.random.randint(k2, (B,), 0, C, dtype=jnp.int32)

    model = BasePredictorPallas(N_word=300, hidden_dim=32, num_layers=2)

    # Explicit small tile -> 3 grid steps, partial last tile, parallel axis.
    loss, pred, acc = model.evaluate(logits, truth, tile_b=8)
    jax.block_until_ready((loss, pred, acc))

    # Pure-JAX reference.
    ref_lse = jax.nn.logsumexp(logits, axis=-1)
    ref_loss = jnp.mean(ref_lse - logits[jnp.arange(B), truth])
    ref_pred = jnp.argmax(logits, axis=-1).astype(jnp.int32)
    ref_acc = jnp.mean((ref_pred == truth).astype(jnp.float32))

    assert jnp.allclose(loss, ref_loss, atol=1e-5), (loss, ref_loss)
    assert jnp.allclose(acc, ref_acc, atol=1e-6), (acc, ref_acc)
    assert jnp.all(pred == ref_pred), (pred, ref_pred)

    # Default auto-tile path (budget-driven, no row cap) used by loss()/etc.
    loss2 = model.loss(logits, truth)
    acc2 = model.accuracy(logits, truth)
    pred2 = model.predict(logits)
    jax.block_until_ready((loss2, acc2, pred2))
    assert jnp.allclose(loss2, ref_loss, atol=1e-5), (loss2, ref_loss)
    assert jnp.allclose(acc2, ref_acc, atol=1e-6), (acc2, ref_acc)
    assert jnp.all(pred2 == ref_pred), (pred2, ref_pred)

    # Native-dtype pass-through (no wrapper-side f32 cast): bf16 logits.
    loss_bf, pred_bf, acc_bf = model.evaluate(logits.astype(jnp.bfloat16), truth)
    jax.block_until_ready((loss_bf, pred_bf, acc_bf))
    assert jnp.allclose(loss_bf, ref_loss, atol=5e-2), (loss_bf, ref_loss)

    print("KERNEL_OK")
</pallas_src>

<mosaic_0001>
module attributes {stable_mosaic.version = 11 : i64} {
  func.func @_fused_predictor_kernel(%arg0: i32, %arg1: memref<8x32xf32, #tpu.memory_space<vmem>>, %arg2: memref<8x1xi32, #tpu.memory_space<vmem>>, %arg3: memref<8x1xi32, #tpu.memory_space<vmem>>, %arg4: memref<1x1x1xf32, #tpu.memory_space<vmem>>, %arg5: memref<1x1x1xf32, #tpu.memory_space<vmem>>) attributes {dimension_semantics = [#tpu.dimension_semantics<parallel>], iteration_bounds = array<i64: 3>, scalar_prefetch = 0 : i64, scratch_operands = 0 : i64, tpu.core_type = #tpu.core_type<tc>, window_params = [{transform_indices = @transform_0, window_bounds = array<i64: 8, 32>}, {transform_indices = @transform_1, window_bounds = array<i64: 8, 1>}, {transform_indices = @transform_2, window_bounds = array<i64: 8, 1>}, {transform_indices = @transform_3, window_bounds = array<i64: 1, 1, 1>}, {transform_indices = @transform_4, window_bounds = array<i64: 1, 1, 1>}]} {
    %c0 = arith.constant 0 : index
    %c0_0 = arith.constant 0 : index
    %0 = vector.load %arg1[%c0, %c0_0] : memref<8x32xf32, #tpu.memory_space<vmem>>, vector<8x32xf32>
    %c0_1 = arith.constant 0 : index
    %c0_2 = arith.constant 0 : index
    %1 = vector.load %arg2[%c0_1, %c0_2] : memref<8x1xi32, #tpu.memory_space<vmem>>, vector<8x1xi32>
    %c8_i32 = arith.constant 8 : i32
    %2 = arith.muli %arg0, %c8_i32 : i32
    %3 = tpu.iota {dimensions = array<i32: 0>} : vector<8x1xi32>
    %4 = vector.broadcast %2 : i32 to vector<8x1xi32>
    %5 = arith.addi %4, %3 : vector<8x1xi32>
    %c20_i32 = arith.constant 20 : i32
    %6 = vector.broadcast %c20_i32 : i32 to vector<8x1xi32>
    %7 = arith.cmpi slt, %5, %6 : vector<8x1xi32>
    %cst = arith.constant dense<0xFF800000> : vector<8xf32>
    %8 = vector.multi_reduction <maximumf>, %0, %cst [1] : vector<8x32xf32> to vector<8xf32>
    %9 = vector.shape_cast %8 : vector<8xf32> to vector<8x1xf32>
    %10 = vector.broadcast %9 : vector<8x1xf32> to vector<8x32xf32>
    %11 = arith.subf %0, %10 : vector<8x32xf32>
    %12 = math.exp %11 : vector<8x32xf32>
    %cst_3 = arith.constant dense<0.000000e+00> : vector<8xf32>
    %13 = vector.multi_reduction <add>, %12, %cst_3 [1] : vector<8x32xf32> to vector<8xf32>
    %14 = vector.shape_cast %13 : vector<8xf32> to vector<8x1xf32>
    %15 = math.log %14 : vector<8x1xf32>
    %16 = arith.addf %9, %15 : vector<8x1xf32>
    %17 = tpu.iota {dimensions = array<i32: 1>} : vector<8x32xi32>
    %18 = vector.broadcast %1 : vector<8x1xi32> to vector<8x32xi32>
    %19 = arith.cmpi eq, %17, %18 : vector<8x32xi32>
    %cst_4 = arith.constant 0.000000e+00 : f32
    %20 = vector.broadcast %cst_4 : f32 to vector<8x32xf32>
    %21 = arith.select %19, %0, %20 : vector<8x32xi1>, vector<8x32xf32>
    %cst_5 = arith.constant dense<0.000000e+00> : vector<8xf32>
    %22 = vector.multi_reduction <add>, %21, %cst_5 [1] : vector<8x32xf32> to vector<8xf32>
    %23 = vector.shape_cast %22 : vector<8xf32> to vector<8x1xf32>
    %24 = arith.subf %16, %23 : vector<8x1xf32>
    %25 = vector.broadcast %9 : vector<8x1xf32> to vector<8x32xf32>
    %26 = arith.cmpf oeq, %0, %25 : vector<8x32xf32>
    %c32_i32 = arith.constant 32 : i32
    %27 = vector.broadcast %c32_i32 : i32 to vector<8x32xi32>
    %28 = arith.select %26, %17, %27 : vector<8x32xi1>, vector<8x32xi32>
    %cst_6 = arith.constant dense<2147483647> : vector<8xi32>
    %29 = vector.multi_reduction <minsi>, %28, %cst_6 [1] : vector<8x32xi32> to vector<8xi32>
    %30 = vector.shape_cast %29 : vector<8xi32> to vector<8x1xi32>
    %c0_7 = arith.constant 0 : index
    %c0_8 = arith.constant 0 : index
    %31 = vector.load %arg3[%c0_7, %c0_8] : memref<8x1xi32, #tpu.memory_space<vmem>>, vector<8x1xi32>
    tpu.vector_store %arg3[%c0_7, %c0_8], %30 {strides = array<i32>} : memref<8x1xi32, #tpu.memory_space<vmem>>, vector<8x1xi32>,
    %32 = arith.cmpi eq, %30, %1 : vector<8x1xi32>
    %33 = arith.extui %32 : vector<8x1xi1> to vector<8x1xi32>
    %34 = arith.sitofp %33 : vector<8x1xi32> to vector<8x1xf32>
    %cst_9 = arith.constant 0.000000e+00 : f32
    %35 = vector.broadcast %cst_9 : f32 to vector<8x1xf32>
    %36 = arith.select %7, %24, %35 : vector<8x1xi1>, vector<8x1xf32>
    %cst_10 = arith.constant dense<0.000000e+00> : vector<1xf32>
    %37 = vector.multi_reduction <add>, %36, %cst_10 [0] : vector<8x1xf32> to vector<1xf32>
    %38 = vector.shape_cast %37 : vector<1xf32> to vector<1x1xf32>
    %cst_11 = arith.constant 0.000000e+00 : f32
    %39 = vector.broadcast %cst_11 : f32 to vector<8x1xf32>
    %40 = arith.select %7, %34, %39 : vector<8x1xi1>, vector<8x1xf32>
    %cst_12 = arith.constant dense<0.000000e+00> : vector<1xf32>
    %41 = vector.multi_reduction <add>, %40, %cst_12 [0] : vector<8x1xf32> to vector<1xf32>
    %42 = vector.shape_cast %41 : vector<1xf32> to vector<1x1xf32>
    %c0_13 = arith.constant 0 : index
    %c0_14 = arith.constant 0 : index
    %c0_15 = arith.constant 0 : index
    %43 = vector.load %arg4[%c0_13, %c0_14, %c0_15] : memref<1x1x1xf32, #tpu.memory_space<vmem>>, vector<1x1x1xf32>
    %44 = vector.shape_cast %43 : vector<1x1x1xf32> to vector<1x1xf32>
    %45 = vector.shape_cast %38 : vector<1x1xf32> to vector<1x1x1xf32>
    tpu.vector_store %arg4[%c0_13, %c0_14, %c0_15], %45 {strides = array<i32>} : memref<1x1x1xf32, #tpu.memory_space<vmem>>, vector<1x1x1xf32>,
    %c0_16 = arith.constant 0 : index
    %c0_17 = arith.constant 0 : index
    %c0_18 = arith.constant 0 : index
    %46 = vector.load %arg5[%c0_16, %c0_17, %c0_18] : memref<1x1x1xf32, #tpu.memory_space<vmem>>, vector<1x1x1xf32>
    %47 = vector.shape_cast %46 : vector<1x1x1xf32> to vector<1x1xf32>
    %48 = vector.shape_cast %42 : vector<1x1xf32> to vector<1x1x1xf32>
    tpu.vector_store %arg5[%c0_16, %c0_17, %c0_18], %48 {strides = array<i32>} : memref<1x1x1xf32, #tpu.memory_space<vmem>>, vector<1x1x1xf32>,
    return
  }
  func.func @transform_0(%arg0: i32) -> (i32, i32) {
    %c0_i32 = arith.constant 0 : i32
    %c0_i32_0 = arith.constant 0 : i32
    return %arg0, %c0_i32 : i32, i32
  }
  func.func @transform_1(%arg0: i32) -> (i32, i32) {
    %c0_i32 = arith.constant 0 : i32
    %c0_i32_0 = arith.constant 0 : i32
    return %arg0, %c0_i32 : i32, i32
  }
  func.func @transform_2(%arg0: i32) -> (i32, i32) {
    %c0_i32 = arith.constant 0 : i32
    %c0_i32_0 = arith.constant 0 : i32
    return %arg0, %c0_i32 : i32, i32
  }
  func.func @transform_3(%arg0: i32) -> (i32, i32, i32) {
    %c0_i32 = arith.constant 0 : i32
    %c0_i32_0 = arith.constant 0 : i32
    %c0_i32_1 = arith.constant 0 : i32
    return %arg0, %c0_i32, %c0_i32_0 : i32, i32, i32
  }
  func.func @transform_4(%arg0: i32) -> (i32, i32, i32) {
    %c0_i32 = arith.constant 0 : i32
    %c0_i32_0 = arith.constant 0 : i32
    %c0_i32_1 = arith.constant 0 : i32
    return %arg0, %c0_i32, %c0_i32_0 : i32, i32, i32
  }
}

</mosaic_0001>

<bundles_post_ra>
// kernel: tpu_custom_call.1
= control target key start
LH: loop header
LB: loop body
LE: loop exit
PB: predicated region body
PF: predicated region fallthrough
CT: control target
= control target key end

     0   :  { %s477_s15 = smov 0   ;;  %s522_s0 = inlined_call_operand.vmem [shape: f32[20,32], index: 0, kind: input, shape index: {}]   ;;  %s523_s1 = inlined_call_operand.vmem [shape: s32[20,1], index: 1, kind: input, shape index: {}]   ;;  %s524_s2 = inlined_call_operand.vmem [shape: s32[20,1], index: 2, kind: output, shape index: {0}]   ;;  %s525_s3 = inlined_call_operand.vmem [shape: f32[3,1,1], index: 3, kind: output, shape index: {1}]   ;;  %s526_s4 = inlined_call_operand.vmem [shape: f32[3,1,1], index: 4, kind: output, shape index: {2}]  }
   0x1 LB: > { %s483_s16 = sadd.s32 4294967295, %s448_s15   ;;  %p418_p0 = scmp.ge.s32.totalorder %s448_s15, 1  ;;  %s448_s15 = sphi %s477_s15, %s15_s15  }
   0x2   : > { %p175_p1 = scmp.lt.s32.totalorder %s448_s15, 4 }
   0x4   : > { %p176_p2 = pnand %p418_p0, %p175_p1 }
   0x5   : > { %p209_p3 = scmp.lt.s32.totalorder (!%p176_p2), %s483_s16, 2  ;;  %v450_v0 = vmov (!%p176_p2), 0   ;;  %vm235_vm0 = vcmask (!%p176_p2), 261120   ;;  %v230_v4 = vlaneseq (!%p176_p2)  ;;  %s422_s25 = sshll.u32 (!%p176_p2), %s483_s16, 3  ;;  %vm276_vm4 = vcmask (!%p176_p2), 7168  }
   0x6   : > { %179 = sbr.rel (%p176_p2) target bundleno = 475 (0x1db), region = 28  ;;  %436 = vset.pattern.permute.xlu1 (!%p176_p2), %v450_v0  ;;  %437 = vset.pattern.permute.xlu0 (!%p176_p2), %v450_v0  ;;  %v232_v26 = vstv (!%p176_p2), %s422_s25  ;;  %v451_v36 = vmov (!%p176_p2), 0.0   ;;  %vm296_vm7 = vcmask (!%p176_p2), 0  }
   0x7   : > { %v249_v5 = vand.u32 (!%p176_p2), 127, %v230_v4  ;;  %v231_v24 = vshrl.u32 (!%p176_p2), %v230_v4, 7 }
   0x9   : > { %v233_v29 = vadd.s32 (!%p176_p2), %v232_v26, %v231_v24 }
   0xb   : > { %vm234_vm5 = vcmp.lt.s32.totalorder (!%p176_p2), %v233_v29, 20 }
   0xd   : > { %s489_s17 = scalar_select %p209_p3, %s483_s16, 2 }
   0xf   : > { %s492_s18 = sshll.u32 %s489_s17, 3  ;;  %s223_s5 = scalar_lea.vmem %s525_s3, %s489_s17 }
  0x10   : > { %s212_s21 = scalar_lea.vmem %s522_s0, %s492_s18  ;;  %s216_s24 = scalar_lea.vmem %s523_s1, %s492_s18 }
  0x11   : > { %v227_v1 = vld [vmem:[%s212_s21] sm:$0xff]  ;;  %s220_s28 = scalar_lea.vmem %s524_s2, %s492_s18  ;;  %s226_s8 = scalar_lea.vmem %s526_s4, %s489_s17 }
  0x12   : > { %v236_v2 = vsel %vm235_vm0, %v227_v1, -inf  ;;  %v228_v3 = vld [vmem:[%s216_s24] sm:$0xff] }
  0x13   : > { %237 = vmax.xlane.f32.xlu0 %v236_v2  ;;  %251 = vperm.xlu1 %436, %v228_v3  }
  0x92   : > { %v252_v15 = vpop.permute.xlu1 %251 }
  0x93   : > { %vm253_vm2 = vcmp.eq.s32.totalorder %v249_v5, %v252_v15 }
  0x94   : > { %v254_v19 = vsel %vm253_vm2, %v227_v1, 0.0 }
  0x95   : > { %v255_v21 = vsel %vm235_vm0, %v254_v19, 0.0 }
  0xa0   : > { %v238_v6 = vpop.xlane.xlu0 %237 }
  0xa1   : > { %v239_v7 = vsub.f32 %v227_v1, %v238_v6  ;;  %vm259_vm1 = vcmp.eq.f32.partialorder %v227_v1, %v238_v6 }
  0xa2   : > { %v260_v8 = vsel %vm259_vm1, %v249_v5, 32 }
  0xa3   : > { %v240_v9 = vmul.f32 1.442695, %v239_v7  ;;  %v261_v10 = vsel %vm235_vm0, %v260_v8, 2147483647 }
  0xa4   : > { %v263_v11 = vshra.s32 %v261_v10, 16  ;;  %v262_v16 = vand.u32 65535, %v261_v10 }
  0xa5   : > { %438 = vpow2.f32 %v240_v9 }
  0xa6   : > { %v265_v12 = vcvt.s32.f32 %v263_v11  ;;  %v264_v18 = vcvt.s32.f32 %v262_v16 }
  0xa8   : > { %266 = vmin.xlane.f32.xlu0 %v265_v12 }
  0xaf   : > { %v439_v13 = vpop.eup %438 }
  0xb0   : > { %v242_v14 = vsel %vm235_vm0, %v439_v13, 0.0 }
  0xb1   : > { %243 = vadd.xlane.f32.xlu1 %v242_v14 }
 0x135   : > { %v267_v17 = vpop.xlane.xlu0 %266 }
 0x136   : > { %vm268_vm3 = vcmp.eq.f32.partialorder %v265_v12, %v267_v17  ;;  %v273_v25 = vcvt.f32.s32 %v267_v17 }
 0x137   : > { %v269_v20 = vsel %vm268_vm3, %v264_v18, inf }
 0x138   : > { %270 = vmin.xlane.f32.xlu0 %v269_v20  ;;  %v274_v30 = vshll.u32 %v273_v25, 16 }
 0x13c   : > { %256 = vadd.xlane.f32.xlu0 %v255_v21 }
 0x13e   : > { %v244_v22 = vpop.xlane.xlu1 %243 }
 0x13f   : > { %440 = vlog2.f32 %v244_v22 }
 0x149   : > { %v441_v23 = vpop.eup %440 }
 0x14a   : > { %v246_v27 = vmul.f32 0.6931472, %v441_v23 }
 0x14c   : > { %v247_v33 = vadd.f32 %v246_v27, %v238_v6 }
 0x1c5   : > { %v271_v28 = vpop.xlane.xlu0 %270 }
 0x1c6   : > { %v272_v31 = vcvt.f32.s32 %v271_v28 }
 0x1c8   : > { %v275_v32 = vadd.s32 %v274_v30, %v272_v31 }
 0x1c9   : > { %v257_v34 = vpop.xlane.xlu0 %256 }
 0x1ca   : > { %vm278_vm6 = vcmp.eq.s32.totalorder %v275_v32, %v228_v3  ;;  %277 = vst.msk [vmem:[%s220_s28] sm:$0xff] %vm276_vm4, %v275_v32  ;;  %v258_v35 = vsub.f32 %v247_v33, %v257_v34 }
 0x1cb   : > { %v423_v37 = vsel %vm278_vm6, 1.0, %v451_v36 }
 0x1cc   : > { %v288_v38 = vsel %vm234_vm5, %v423_v37, 0.0  ;;  %v281_v39 = vsel %vm234_vm5, %v258_v35, 0.0 }
 0x1cd   : > { %v289_v40 = vsel %vm276_vm4, %v288_v38, 0.0  ;;  %v282_v41 = vrot.slane %v281_v39, 4 }
 0x1ce   : > { %v290_v42 = vrot.slane %v289_v40, 4 }
 0x1cf   : > { %v283_v43 = vadd.f32 %v282_v41, %v281_v39 }
 0x1d0   : > { %v291_v44 = vadd.f32 %v290_v42, %v289_v40 }
 0x1d1   : > { %v284_v45 = vrot.slane %v283_v43, 2 }
 0x1d2   : > { %v292_v46 = vrot.slane %v291_v44, 2 }
 0x1d3   : > { %v285_v47 = vadd.f32 %v284_v45, %v283_v43 }
 0x1d4   : > { %v293_v48 = vadd.f32 %v292_v46, %v291_v44 }
 0x1d5   : > { %v286_v49 = vrot.slane %v285_v47, 1 }
 0x1d6   : > { %v294_v50 = vrot.slane %v293_v48, 1 }
 0x1d7   : > { %v287_v51 = vadd.f32 %v286_v49, %v285_v47 }
 0x1d8   : > { %v295_v52 = vadd.f32 %v294_v50, %v293_v48 }
 0x1d9   : > { %297 = vst.msk [vmem:[%s223_s5] sm:$0x1] %vm296_vm7, %v287_v51 }
 0x1da   : > { %298 = vst.msk [vmem:[%s226_s8] sm:$0x1] %vm296_vm7, %v295_v52 }
 0x1db PF: > { %s15_s15 = sadd.s32 1, %s448_s15  }
 0x1dc   : > { %p12_p4 = scmp.ge.s32.totalorder %s15_s15, 5  }
 0x1de   :  { %14 = sbr.rel (!%p12_p4) target bundleno = 1 (0x1), region = 85 }

</bundles_post_ra>
